<compile_context>
chip_gen: v7x
topology: tpu7x:2x2x1
jax: 0.10.0
libtpu: 0.0.40
codegen_flags: <defaults>
</compile_context>

<pallas_src>
import numpy as np
import jax
import jax.numpy as jnp
from jax.experimental import pallas as pl
from jax.experimental.pallas import tpu as pltpu  # noqa: F401  (TPU tuning hooks)


# ----------------------------------------------------------------------------
# Single fused kernel.  Batch lives on the LANE axis everywhere.
#   x_ref   : (F0, B*N1)        input signal
#   s0p_ref : (K-1, B*N1, B*N1) host-precomputed S0^k (k=1..K-1), block-diag
#   s1p_ref : (K-1, B*N2, B*N2) host-precomputed S1^k (k=1..K-1), block-diag
#   h0_ref  : (K, F1, F0)       stage-0 taps (shared across batch lanes)
#   b0_ref  : (F1, 1)
#   e1_ref  : (B*N1, B*N2)      one-hot endpoint-1 gather (block-diag)
#   e2_ref  : (B*N1, B*N2)      one-hot endpoint-2 gather (block-diag)
#   h1_ref  : (K, F2, F1)
#   b1_ref  : (F2, 1)
#   w1_ref  : (D0, F2), rb1_ref: (D0, 1)   readout layer 1
#   w2_ref  : (D1, D0), rb2_ref: (D1, 1)   readout layer 2
#   o_ref   : (D1, B*N2)        lane-dense 2D output slab
# ----------------------------------------------------------------------------
def fused_localgnn_kernel(x_ref, s0p_ref, s1p_ref,
                          h0_ref, b0_ref, e1_ref, e2_ref,
                          h1_ref, b1_ref,
                          w1_ref, rb1_ref, w2_ref, rb2_ref,
                          o_ref):
    f32 = jnp.float32
    x = x_ref[...].astype(f32)                         # (F0, B*N1)

    # ---- stage 0: K-tap LSIGF + bias + ReLU.
    # S^k precomputed on host -> the K shifted signals are independent MXU
    # pushes; the tap contraction is K accumulating matmuls (no concat).
    k0 = h0_ref.shape[0]                               # static python int (= K)
    y0 = jnp.dot(h0_ref[0], x, preferred_element_type=f32)
    for k in range(1, k0):
        zk = jnp.dot(x, s0p_ref[k - 1], preferred_element_type=f32)
        y0 = y0 + jnp.dot(h0_ref[k], zk, preferred_element_type=f32)
    y0 = jnp.maximum(y0 + b0_ref[...], 0.0)            # (F1, B*N1)

    # ---- clique -> line max pool:
    #   max_n( y0[n] * Binc[n, m] ) == max(0, y0[e1[m]]*B[e1], y0[e2[m]]*B[e2])
    # Valid because y0 >= 0 (post-ReLU) and incidence entries are >= 0
    # (documented assumption of this instantiation).
    g1 = jnp.dot(y0, e1_ref[...], preferred_element_type=f32)
    g2 = jnp.dot(y0, e2_ref[...], preferred_element_type=f32)
    p = jnp.maximum(jnp.maximum(g1, g2), 0.0)          # (F1, B*N2)

    # ---- stage 1: K-tap LSIGF + bias + ReLU (same independent-push structure)
    k1 = h1_ref.shape[0]
    y1 = jnp.dot(h1_ref[0], p, preferred_element_type=f32)
    for k in range(1, k1):
        wk = jnp.dot(p, s1p_ref[k - 1], preferred_element_type=f32)
        y1 = y1 + jnp.dot(h1_ref[k], wk, preferred_element_type=f32)
    y1 = jnp.maximum(y1 + b1_ref[...], 0.0)            # (F2, B*N2)

    # ---- node-wise readout MLP, feature-major (weights shared across lanes)
    r1 = jnp.dot(w1_ref[...], y1, preferred_element_type=f32) + rb1_ref[...]
    r1 = jnp.maximum(r1, 0.0)                          # (D0, B*N2)
    r2 = jnp.dot(w2_ref[...], r1, preferred_element_type=f32) + rb2_ref[...]

    # ---- single lane-dense 2D store; (node, feature) permute happens in the
    #      wrapper as a fused XLA reshape/transpose (no in-kernel transpose,
    #      no per-batch masked stores).
    o_ref[...] = r2.astype(o_ref.dtype)                # (D1, B*N2)


# ----------------------------------------------------------------------------
# Wrapper: one grid-free pallas_call, every operand staged whole into VMEM
# (default whole-array BlockSpecs; total footprint is a few tens of KiB).
# ----------------------------------------------------------------------------
def local_gnn_line_forward(x, fp):
    B, F0, N1 = x.shape
    N2 = fp["E1"].shape[1] // B
    D1 = fp["w2"].shape[0]

    # Fold batch into LANES: x2d[f, b*N1 + n] = x[b, f, n]
    x2d = jnp.transpose(x, (1, 0, 2)).reshape(F0, B * N1)

    out2d = pl.pallas_call(
        fused_localgnn_kernel,
        out_shape=jax.ShapeDtypeStruct((D1, B * N2), x.dtype),
    )(x2d, fp["S0pow"], fp["S1pow"],
      fp["h0"], fp["bias0"], fp["E1"], fp["E2"],
      fp["h1"], fp["bias1"],
      fp["w1"], fp["b1"], fp["w2"], fp["b2"])

    # out2d[d, b*N2 + m]  ->  (B, N2, D1)
    return jnp.transpose(out2d.reshape(D1, B, N2), (1, 2, 0))


# ----------------------------------------------------------------------------
# Host-side, one-time parameter preparation (lane-packed layouts).
# Only the GSOs / incidence gathers get block-diagonal batch replication;
# all learned weights stay at their original (tiny) size.
# ----------------------------------------------------------------------------
def prepare_fused_params(p, batch):
    S0 = np.asarray(p["S0"], np.float32)           # (N1, N1)
    S1 = np.asarray(p["S1"], np.float32)           # (N2, N2)
    h0 = np.asarray(p["h0"], np.float32)           # (F1, K, F0)
    h1 = np.asarray(p["h1"], np.float32)           # (F2, K, F1)
    bias0 = np.asarray(p["bias0"], np.float32)     # (F1, 1)
    bias1 = np.asarray(p["bias1"], np.float32)     # (F2, 1)
    Binc = np.asarray(p["B0"], np.float32)         # (N1, N2)
    w1 = np.asarray(p["w1"], np.float32)           # (D0, F2)
    b1 = np.asarray(p["b1"], np.float32).reshape(-1, 1)
    w2 = np.asarray(p["w2"], np.float32)           # (D1, D0)
    b2 = np.asarray(p["b2"], np.float32).reshape(-1, 1)

    eye_b = np.eye(batch, dtype=np.float32)
    K0, K1 = h0.shape[1], h1.shape[1]
    assert K0 >= 2 and K1 >= 2, "K=1 would need a degenerate (empty) S-power stack"

    def s_powers_blockdiag(S, K):
        # Precompute S^1 .. S^{K-1}, block-diagonal over batch (batch on lanes).
        pows, acc = [], np.eye(S.shape[0], dtype=np.float32)
        for _ in range(K - 1):
            acc = acc @ S
            pows.append(np.kron(eye_b, acc))
        return np.stack(pows, axis=0)              # (K-1, B*N, B*N)

    # One-hot "gather" matrices: the (at most) two incident clique nodes per
    # line node, carrying the incidence weights.
    N1, N2 = Binc.shape
    E1 = np.zeros((N1, N2), np.float32)
    E2 = np.zeros((N1, N2), np.float32)
    for m in range(N2):
        nz = np.nonzero(Binc[:, m])[0]
        assert len(nz) <= 2, "clique->line incidence must have <=2 nonzeros/col"
        if len(nz) >= 1:
            E1[nz[0], m] = Binc[nz[0], m]
            E2[nz[-1], m] = Binc[nz[-1], m]

    return {
        "S0pow": jnp.asarray(s_powers_blockdiag(S0, K0)),
        "S1pow": jnp.asarray(s_powers_blockdiag(S1, K1)),
        "h0": jnp.asarray(np.transpose(h0, (1, 0, 2))),   # (K, F1, F0)
        "bias0": jnp.asarray(bias0),
        "E1": jnp.asarray(np.kron(eye_b, E1)),             # (B*N1, B*N2)
        "E2": jnp.asarray(np.kron(eye_b, E2)),
        "h1": jnp.asarray(np.transpose(h1, (1, 0, 2))),   # (K, F2, F1)
        "bias1": jnp.asarray(bias1),
        "w1": jnp.asarray(w1), "b1": jnp.asarray(b1),
        "w2": jnp.asarray(w2), "b2": jnp.asarray(b2),
    }


# ----------------------------------------------------------------------------
# Pure-JAX reference (mirrors the PyTorch forward semantics), run at highest
# matmul precision so the tolerance can be tightened.
# ----------------------------------------------------------------------------
def _graph_filter_relu_ref(x, S, h, bias):
    K = h.shape[1]
    z = x
    acc = jnp.zeros((x.shape[0], h.shape[0], x.shape[2]), jnp.float32)
    for k in range(K):
        acc = acc + jnp.einsum("fg,bgn->bfn", h[:, k, :], z, precision="highest")
        z = jnp.einsum("bgm,mn->bgn", z, S, precision="highest")
    return jnp.maximum(acc + bias[None], 0.0)


def _forward_ref(x, p):
    y = _graph_filter_relu_ref(x, p["S0"], p["h0"], p["bias0"])
    # torch.einsum('bfn,nm->bfnm') followed by max over n
    y = jnp.max(y[:, :, :, None] * p["B0"][None, None, :, :], axis=2)
    y = _graph_filter_relu_ref(y, p["S1"], p["h1"], p["bias1"])
    y = jnp.transpose(y, (0, 2, 1))
    r1 = jnp.maximum(
        jnp.einsum("bnf,df->bnd", y, p["w1"], precision="highest") + p["b1"], 0.0)
    return jnp.einsum("bnd,ed->bne", r1, p["w2"], precision="highest") + p["b2"]


# ----------------------------------------------------------------------------
# Deterministic parameter construction (concrete instantiation of the module:
#   dimSignals=[[4,16],[16,32]], nFilterTaps=[[3],[3]], dimReadout=[32,8],
#   nSelectedNodes=None (NoPool identity), permIdentity order, sourceEdges=None)
# ----------------------------------------------------------------------------
def make_params(key):
    N1, N2 = 16, 12            # clique nodes / line nodes
    F0, F1, F2 = 4, 16, 32     # signal dims per stage
    K = 3                      # filter taps per stage
    D0, D1 = 32, 8             # readout dims

    ks = jax.random.split(key, 8)

    a0 = (jax.random.uniform(ks[0], (N1, N1)) < 0.3).astype(jnp.float32)
    a0 = jnp.triu(a0, 1); a0 = a0 + a0.T
    l0 = jnp.diag(jnp.sum(a0, axis=1)) - a0
    S0 = l0 / (jnp.max(jnp.abs(l0)) + 1e-6)

    a1 = (jax.random.uniform(ks[1], (N2, N2)) < 0.4).astype(jnp.float32)
    a1 = jnp.triu(a1, 1); a1 = a1 + a1.T
    l1 = jnp.diag(jnp.sum(a1, axis=1)) - a1
    S1 = l1 / (jnp.max(jnp.abs(l1)) + 1e-6)

    # Incidence matrix (N1, N2): exactly two ones per column (edge endpoints)
    b0 = np.zeros((N1, N2), dtype=np.float32)
    for m in range(N2):
        b0[m % N1, m] = 1.0
        b0[(3 * m + 1) % N1, m] = 1.0
    B0 = jnp.asarray(b0)

    return {
        "S0": S0, "S1": S1, "B0": B0,
        # GraphFilter weights (F_out, K, F_in) [E=1 squeezed], bias (F_out, 1)
        "h0": 0.1 * jax.random.normal(ks[2], (F1, K, F0), jnp.float32),
        "bias0": 0.1 * jax.random.normal(ks[3], (F1, 1), jnp.float32),
        "h1": 0.1 * jax.random.normal(ks[4], (F2, K, F1), jnp.float32),
        "bias1": 0.1 * jax.random.normal(ks[5], (F2, 1), jnp.float32),
        # Readout Linear weights in torch convention (out, in)
        "w1": 0.1 * jax.random.normal(ks[6], (D0, F2), jnp.float32),
        "b1": jnp.full((D0,), 0.01, jnp.float32),
        "w2": 0.1 * jax.random.normal(ks[7], (D1, D0), jnp.float32),
        "b2": jnp.full((D1,), 0.01, jnp.float32),
    }


if __name__ == "__main__":
    key = jax.random.PRNGKey(0)
    kx, kp = jax.random.split(key)

    params = make_params(kp)
    batch, F0, N1 = 2, 4, 16
    x = jax.random.normal(kx, (batch, F0, N1), jnp.float32)

    fused_params = prepare_fused_params(params, batch)

    fwd = jax.jit(local_gnn_line_forward)
    y = jax.block_until_ready(fwd(x, fused_params))
    assert y.shape == (batch, 12, 8), y.shape

    y_ref = _forward_ref(x, params)
    # Tightened from 5e-2 -> 1e-3 (catches layout/packing bugs); kept above
    # pure-roundoff level to stay robust to default vs. highest matmul
    # precision paths on the MXU.
    np.testing.assert_allclose(np.asarray(y), np.asarray(y_ref),
                               rtol=1e-3, atol=1e-3)

    print("KERNEL_OK")
</pallas_src>

<mosaic_0001>
module attributes {stable_mosaic.version = 11 : i64} {
  func.func @fused_localgnn_kernel(%arg0: memref<4x32xf32, #tpu.memory_space<vmem>>, %arg1: memref<2x32x32xf32, #tpu.memory_space<vmem>>, %arg2: memref<2x24x24xf32, #tpu.memory_space<vmem>>, %arg3: memref<3x16x4xf32, #tpu.memory_space<vmem>>, %arg4: memref<16x1xf32, #tpu.memory_space<vmem>>, %arg5: memref<32x24xf32, #tpu.memory_space<vmem>>, %arg6: memref<32x24xf32, #tpu.memory_space<vmem>>, %arg7: memref<3x32x16xf32, #tpu.memory_space<vmem>>, %arg8: memref<32x1xf32, #tpu.memory_space<vmem>>, %arg9: memref<32x32xf32, #tpu.memory_space<vmem>>, %arg10: memref<32x1xf32, #tpu.memory_space<vmem>>, %arg11: memref<8x32xf32, #tpu.memory_space<vmem>>, %arg12: memref<8x1xf32, #tpu.memory_space<vmem>>, %arg13: memref<8x24xf32, #tpu.memory_space<vmem>>) attributes {dimension_semantics = [], scalar_prefetch = 0 : i64, scratch_operands = 0 : i64, tpu.core_type = #tpu.core_type<tc>} {
    %c0 = arith.constant 0 : index
    %c0_0 = arith.constant 0 : index
    %0 = vector.load %arg0[%c0, %c0_0] : memref<4x32xf32, #tpu.memory_space<vmem>>, vector<4x32xf32>
    %c0_1 = arith.constant 0 : index
    %c0_2 = arith.constant 0 : index
    %c0_3 = arith.constant 0 : index
    %1 = vector.load %arg3[%c0_1, %c0_2, %c0_3] : memref<3x16x4xf32, #tpu.memory_space<vmem>>, vector<1x16x4xf32>
    %2 = vector.shape_cast %1 : vector<1x16x4xf32> to vector<16x4xf32>
    %cst = arith.constant dense<0.000000e+00> : vector<16x32xf32>
    %3 = tpu.matmul %2, %0, %cst {dimension_numbers = #tpu.dot_dimension_numbers<[1], [0], [0], [1], [0, 0, 1, 1], [], []>} : vector<16x4xf32>, vector<4x32xf32>, vector<16x32xf32> -> vector<16x32xf32>
    %c0_4 = arith.constant 0 : index
    %c0_5 = arith.constant 0 : index
    %c0_6 = arith.constant 0 : index
    %4 = vector.load %arg1[%c0_4, %c0_5, %c0_6] : memref<2x32x32xf32, #tpu.memory_space<vmem>>, vector<1x32x32xf32>
    %5 = vector.shape_cast %4 : vector<1x32x32xf32> to vector<32x32xf32>
    %cst_7 = arith.constant dense<0.000000e+00> : vector<4x32xf32>
    %6 = tpu.matmul %0, %5, %cst_7 {dimension_numbers = #tpu.dot_dimension_numbers<[1], [0], [0], [1], [0, 0, 1, 1], [], []>} : vector<4x32xf32>, vector<32x32xf32>, vector<4x32xf32> -> vector<4x32xf32>
    %c1 = arith.constant 1 : index
    %c0_8 = arith.constant 0 : index
    %c0_9 = arith.constant 0 : index
    %7 = vector.load %arg3[%c1, %c0_8, %c0_9] : memref<3x16x4xf32, #tpu.memory_space<vmem>>, vector<1x16x4xf32>
    %8 = vector.shape_cast %7 : vector<1x16x4xf32> to vector<16x4xf32>
    %cst_10 = arith.constant dense<0.000000e+00> : vector<16x32xf32>
    %9 = tpu.matmul %8, %6, %cst_10 {dimension_numbers = #tpu.dot_dimension_numbers<[1], [0], [0], [1], [0, 0, 1, 1], [], []>} : vector<16x4xf32>, vector<4x32xf32>, vector<16x32xf32> -> vector<16x32xf32>
    %10 = arith.addf %3, %9 : vector<16x32xf32>
    %c1_11 = arith.constant 1 : index
    %c0_12 = arith.constant 0 : index
    %c0_13 = arith.constant 0 : index
    %11 = vector.load %arg1[%c1_11, %c0_12, %c0_13] : memref<2x32x32xf32, #tpu.memory_space<vmem>>, vector<1x32x32xf32>
    %12 = vector.shape_cast %11 : vector<1x32x32xf32> to vector<32x32xf32>
    %cst_14 = arith.constant dense<0.000000e+00> : vector<4x32xf32>
    %13 = tpu.matmul %0, %12, %cst_14 {dimension_numbers = #tpu.dot_dimension_numbers<[1], [0], [0], [1], [0, 0, 1, 1], [], []>} : vector<4x32xf32>, vector<32x32xf32>, vector<4x32xf32> -> vector<4x32xf32>
    %c2 = arith.constant 2 : index
    %c0_15 = arith.constant 0 : index
    %c0_16 = arith.constant 0 : index
    %14 = vector.load %arg3[%c2, %c0_15, %c0_16] : memref<3x16x4xf32, #tpu.memory_space<vmem>>, vector<1x16x4xf32>
    %15 = vector.shape_cast %14 : vector<1x16x4xf32> to vector<16x4xf32>
    %cst_17 = arith.constant dense<0.000000e+00> : vector<16x32xf32>
    %16 = tpu.matmul %15, %13, %cst_17 {dimension_numbers = #tpu.dot_dimension_numbers<[1], [0], [0], [1], [0, 0, 1, 1], [], []>} : vector<16x4xf32>, vector<4x32xf32>, vector<16x32xf32> -> vector<16x32xf32>
    %17 = arith.addf %10, %16 : vector<16x32xf32>
    %c0_18 = arith.constant 0 : index
    %c0_19 = arith.constant 0 : index
    %18 = vector.load %arg4[%c0_18, %c0_19] : memref<16x1xf32, #tpu.memory_space<vmem>>, vector<16x1xf32>
    %19 = vector.broadcast %18 : vector<16x1xf32> to vector<16x32xf32>
    %20 = arith.addf %17, %19 : vector<16x32xf32>
    %cst_20 = arith.constant 0.000000e+00 : f32
    %21 = vector.broadcast %cst_20 : f32 to vector<16x32xf32>
    %22 = arith.maximumf %20, %21 : vector<16x32xf32>
    %c0_21 = arith.constant 0 : index
    %c0_22 = arith.constant 0 : index
    %23 = vector.load %arg5[%c0_21, %c0_22] : memref<32x24xf32, #tpu.memory_space<vmem>>, vector<32x24xf32>
    %cst_23 = arith.constant dense<0.000000e+00> : vector<16x24xf32>
    %24 = tpu.matmul %22, %23, %cst_23 {dimension_numbers = #tpu.dot_dimension_numbers<[1], [0], [0], [1], [0, 0, 1, 1], [], []>} : vector<16x32xf32>, vector<32x24xf32>, vector<16x24xf32> -> vector<16x24xf32>
    %c0_24 = arith.constant 0 : index
    %c0_25 = arith.constant 0 : index
    %25 = vector.load %arg6[%c0_24, %c0_25] : memref<32x24xf32, #tpu.memory_space<vmem>>, vector<32x24xf32>
    %cst_26 = arith.constant dense<0.000000e+00> : vector<16x24xf32>
    %26 = tpu.matmul %22, %25, %cst_26 {dimension_numbers = #tpu.dot_dimension_numbers<[1], [0], [0], [1], [0, 0, 1, 1], [], []>} : vector<16x32xf32>, vector<32x24xf32>, vector<16x24xf32> -> vector<16x24xf32>
    %27 = arith.maximumf %24, %26 : vector<16x24xf32>
    %cst_27 = arith.constant 0.000000e+00 : f32
    %28 = vector.broadcast %cst_27 : f32 to vector<16x24xf32>
    %29 = arith.maximumf %27, %28 : vector<16x24xf32>
    %c0_28 = arith.constant 0 : index
    %c0_29 = arith.constant 0 : index
    %c0_30 = arith.constant 0 : index
    %30 = vector.load %arg7[%c0_28, %c0_29, %c0_30] : memref<3x32x16xf32, #tpu.memory_space<vmem>>, vector<1x32x16xf32>
    %31 = vector.shape_cast %30 : vector<1x32x16xf32> to vector<32x16xf32>
    %cst_31 = arith.constant dense<0.000000e+00> : vector<32x24xf32>
    %32 = tpu.matmul %31, %29, %cst_31 {dimension_numbers = #tpu.dot_dimension_numbers<[1], [0], [0], [1], [0, 0, 1, 1], [], []>} : vector<32x16xf32>, vector<16x24xf32>, vector<32x24xf32> -> vector<32x24xf32>
    %c0_32 = arith.constant 0 : index
    %c0_33 = arith.constant 0 : index
    %c0_34 = arith.constant 0 : index
    %33 = vector.load %arg2[%c0_32, %c0_33, %c0_34] : memref<2x24x24xf32, #tpu.memory_space<vmem>>, vector<1x24x24xf32>
    %34 = vector.shape_cast %33 : vector<1x24x24xf32> to vector<24x24xf32>
    %cst_35 = arith.constant dense<0.000000e+00> : vector<16x24xf32>
    %35 = tpu.matmul %29, %34, %cst_35 {dimension_numbers = #tpu.dot_dimension_numbers<[1], [0], [0], [1], [0, 0, 1, 1], [], []>} : vector<16x24xf32>, vector<24x24xf32>, vector<16x24xf32> -> vector<16x24xf32>
    %c1_36 = arith.constant 1 : index
    %c0_37 = arith.constant 0 : index
    %c0_38 = arith.constant 0 : index
    %36 = vector.load %arg7[%c1_36, %c0_37, %c0_38] : memref<3x32x16xf32, #tpu.memory_space<vmem>>, vector<1x32x16xf32>
    %37 = vector.shape_cast %36 : vector<1x32x16xf32> to vector<32x16xf32>
    %cst_39 = arith.constant dense<0.000000e+00> : vector<32x24xf32>
    %38 = tpu.matmul %37, %35, %cst_39 {dimension_numbers = #tpu.dot_dimension_numbers<[1], [0], [0], [1], [0, 0, 1, 1], [], []>} : vector<32x16xf32>, vector<16x24xf32>, vector<32x24xf32> -> vector<32x24xf32>
    %39 = arith.addf %32, %38 : vector<32x24xf32>
    %c1_40 = arith.constant 1 : index
    %c0_41 = arith.constant 0 : index
    %c0_42 = arith.constant 0 : index
    %40 = vector.load %arg2[%c1_40, %c0_41, %c0_42] : memref<2x24x24xf32, #tpu.memory_space<vmem>>, vector<1x24x24xf32>
    %41 = vector.shape_cast %40 : vector<1x24x24xf32> to vector<24x24xf32>
    %cst_43 = arith.constant dense<0.000000e+00> : vector<16x24xf32>
    %42 = tpu.matmul %29, %41, %cst_43 {dimension_numbers = #tpu.dot_dimension_numbers<[1], [0], [0], [1], [0, 0, 1, 1], [], []>} : vector<16x24xf32>, vector<24x24xf32>, vector<16x24xf32> -> vector<16x24xf32>
    %c2_44 = arith.constant 2 : index
    %c0_45 = arith.constant 0 : index
    %c0_46 = arith.constant 0 : index
    %43 = vector.load %arg7[%c2_44, %c0_45, %c0_46] : memref<3x32x16xf32, #tpu.memory_space<vmem>>, vector<1x32x16xf32>
    %44 = vector.shape_cast %43 : vector<1x32x16xf32> to vector<32x16xf32>
    %cst_47 = arith.constant dense<0.000000e+00> : vector<32x24xf32>
    %45 = tpu.matmul %44, %42, %cst_47 {dimension_numbers = #tpu.dot_dimension_numbers<[1], [0], [0], [1], [0, 0, 1, 1], [], []>} : vector<32x16xf32>, vector<16x24xf32>, vector<32x24xf32> -> vector<32x24xf32>
    %46 = arith.addf %39, %45 : vector<32x24xf32>
    %c0_48 = arith.constant 0 : index
    %c0_49 = arith.constant 0 : index
    %47 = vector.load %arg8[%c0_48, %c0_49] : memref<32x1xf32, #tpu.memory_space<vmem>>, vector<32x1xf32>
    %48 = vector.broadcast %47 : vector<32x1xf32> to vector<32x24xf32>
    %49 = arith.addf %46, %48 : vector<32x24xf32>
    %cst_50 = arith.constant 0.000000e+00 : f32
    %50 = vector.broadcast %cst_50 : f32 to vector<32x24xf32>
    %51 = arith.maximumf %49, %50 : vector<32x24xf32>
    %c0_51 = arith.constant 0 : index
    %c0_52 = arith.constant 0 : index
    %52 = vector.load %arg9[%c0_51, %c0_52] : memref<32x32xf32, #tpu.memory_space<vmem>>, vector<32x32xf32>
    %cst_53 = arith.constant dense<0.000000e+00> : vector<32x24xf32>
    %53 = tpu.matmul %52, %51, %cst_53 {dimension_numbers = #tpu.dot_dimension_numbers<[1], [0], [0], [1], [0, 0, 1, 1], [], []>} : vector<32x32xf32>, vector<32x24xf32>, vector<32x24xf32> -> vector<32x24xf32>
    %c0_54 = arith.constant 0 : index
    %c0_55 = arith.constant 0 : index
    %54 = vector.load %arg10[%c0_54, %c0_55] : memref<32x1xf32, #tpu.memory_space<vmem>>, vector<32x1xf32>
    %55 = vector.broadcast %54 : vector<32x1xf32> to vector<32x24xf32>
    %56 = arith.addf %53, %55 : vector<32x24xf32>
    %cst_56 = arith.constant 0.000000e+00 : f32
    %57 = vector.broadcast %cst_56 : f32 to vector<32x24xf32>
    %58 = arith.maximumf %56, %57 : vector<32x24xf32>
    %c0_57 = arith.constant 0 : index
    %c0_58 = arith.constant 0 : index
    %59 = vector.load %arg11[%c0_57, %c0_58] : memref<8x32xf32, #tpu.memory_space<vmem>>, vector<8x32xf32>
    %cst_59 = arith.constant dense<0.000000e+00> : vector<8x24xf32>
    %60 = tpu.matmul %59, %58, %cst_59 {dimension_numbers = #tpu.dot_dimension_numbers<[1], [0], [0], [1], [0, 0, 1, 1], [], []>} : vector<8x32xf32>, vector<32x24xf32>, vector<8x24xf32> -> vector<8x24xf32>
    %c0_60 = arith.constant 0 : index
    %c0_61 = arith.constant 0 : index
    %61 = vector.load %arg12[%c0_60, %c0_61] : memref<8x1xf32, #tpu.memory_space<vmem>>, vector<8x1xf32>
    %62 = vector.broadcast %61 : vector<8x1xf32> to vector<8x24xf32>
    %63 = arith.addf %60, %62 : vector<8x24xf32>
    %c0_62 = arith.constant 0 : index
    %c0_63 = arith.constant 0 : index
    %64 = vector.load %arg13[%c0_62, %c0_63] : memref<8x24xf32, #tpu.memory_space<vmem>>, vector<8x24xf32>
    tpu.vector_store %arg13[%c0_62, %c0_63], %63 {strides = array<i32>} : memref<8x24xf32, #tpu.memory_space<vmem>>, vector<8x24xf32>,
    return
  }
}

</mosaic_0001>

<bundles_post_ra>
// kernel: local_gnn_line_forward.1
= control target key start
LH: loop header
LB: loop body
LE: loop exit
PB: predicated region body
PF: predicated region fallthrough
CT: control target
= control target key end

     0   :  { %v1704_v0 = vmov 0.0|0.0   ;;  %vm1705_vm0 = vmmov 0   ;;  %v1706_v4 = vmov 0.0   ;;  %vm51_vm1 = vcmask 261120   ;;  %s2004_s1 = inlined_call_operand.vmem [shape: f32[2,32,32], index: 1, kind: input, shape index: {}]   ;;  %s2005_s0 = inlined_call_operand.vmem [shape: f32[4,32], index: 0, kind: input, shape index: {}]   ;;  %s2006_s3 = inlined_call_operand.vmem [shape: f32[3,16,4], index: 3, kind: input, shape index: {}]   ;;  %s2007_s4 = inlined_call_operand.vmem [shape: f32[16,1], index: 4, kind: input, shape index: {}]   ;;  %s2008_s8 = inlined_call_operand.vmem [shape: f32[32,1], index: 8, kind: input, shape index: {}]   ;;  %s2009_s10 = inlined_call_operand.vmem [shape: f32[32,1], index: 10, kind: input, shape index: {}]   ;;  %s2010_s12 = inlined_call_operand.vmem [shape: f32[8,1], index: 12, kind: input, shape index: {}]   ;;  %s2011_s5 = inlined_call_operand.vmem [shape: f32[32,24], index: 5, kind: input, shape index: {}]   ;;  %s2012_s6 = inlined_call_operand.vmem [shape: f32[32,24], index: 6, kind: input, shape index: {}]   ;;  %s2013_s2 = inlined_call_operand.vmem [shape: f32[2,24,24], index: 2, kind: input, shape index: {}]   ;;  %s2014_s7 = inlined_call_operand.vmem [shape: f32[3,32,16], index: 7, kind: input, shape index: {}]   ;;  %s2015_s9 = inlined_call_operand.vmem [shape: f32[32,32], index: 9, kind: input, shape index: {}]   ;;  %s2016_s11 = inlined_call_operand.vmem [shape: f32[8,32], index: 11, kind: input, shape index: {}]   ;;  %s2017_s13 = inlined_call_operand.vmem [shape: f32[8,24], index: 13, kind: output, shape index: {}]  }
   0x1   :  { %1624 = vmatprep.subr.bf16.mxu0 %v1704_v0  ;;  %v47_v1 = vld [vmem:[%s2004_s1] sm:$0xff]  ;;  %v48_v2 = vld [vmem:[%s2004_s1 + $0x8] sm:$0xff]  ;;  %v49_v3 = vld [vmem:[%s2004_s1 + $0x10] sm:$0xff]  ;;  %1500 = vmatprep.mubr.msk.f32.mxu0 %vm1705_vm0, %v1706_v4  ;;  %vm128_vm2 = vcmask 31744   ;;  %vm135_vm3 = vcmask 1043456   ;;  %v1707_v22 = vmov 0  }
   0x2   :  { %v1625_v5 = vpack.c.bf16 %v48_v2, %v47_v1  ;;  %v50_v6 = vld [vmem:[%s2004_s1 + $0x18] sm:$0xff]  ;;  %v44_v8 = vld [vmem:[%s2005_s0] sm:$0xf]  ;;  %v1366_v9 = vld [vmem:[%s2006_s3 + $0x10] sm:$0xff]  ;;  %1702 = vset.pattern.permute.xlu0 %v1707_v22  ;;  %1703 = vset.pattern.permute.xlu1 %v1707_v22  ;;  %vm652_vm4 = vcmask 195584   ;;  %vm739_vm5 = vcmask 130048  }
   0x3   :  { %v1628_v7 = vpack.c.bf16 %v50_v6, %v49_v3  ;;  %1505 = vmatprep.mubr.msk.f32.mxu1 %vm128_vm2, %v1366_v9  ;;  %v1367_v11 = vld [vmem:[%s2006_s3 + $0x18] sm:$0xff]  ;;  %v45_v13 = vld [vmem:[%s2006_s3] sm:$0xff]  ;;  %v1375_v15 = vld [vmem:[%s2004_s1 + $0x28] sm:$0xff] }
   0x4   :  { %1626 = vmatpush3.bf16.msra.mxu0 %v1625_v5  ;;  %v1374_v14 = vld [vmem:[%s2004_s1 + $0x20] sm:$0xff]  ;;  %v46_v16 = vld [vmem:[%s2006_s3 + $0x8] sm:$0xff]  ;;  %v1376_v18 = vld [vmem:[%s2004_s1 + $0x30] sm:$0xff] }
   0x5   :  { %1627 = vmatprep.subr.bf16.mxu0 %v1704_v0  ;;  %v1631_v17 = vpack.c.bf16 %v1375_v15, %v1374_v14  ;;  %v1377_v19 = vld [vmem:[%s2004_s1 + $0x38] sm:$0xff]  ;;  %v1379_v21 = vld [vmem:[%s2006_s3 + $0x20] sm:$0xff]  ;;  %v462_v24 = vld [vmem:[%s2007_s4 + $0x8] sm:$0xff] }
   0x6   :  { %v1634_v20 = vpack.c.bf16 %v1377_v19, %v1376_v18  ;;  %v461_v23 = vld [vmem:[%s2007_s4] sm:$0xff]  ;;  %v1121_v25 = vld [vmem:[%s2008_s8 + $0x10] sm:$0xff]  ;;  %v478_v29 = vld [vmem:[%s2011_s5 + $0x8] sm:$0xff] }
   0x7   :  { %465 = vperm.xlu0 %1702, %v461_v23   ;;  %v1155_v26 = vld [vmem:[%s2009_s10] sm:$0xff]  ;;  %v1157_v27 = vld [vmem:[%s2009_s10 + $0x10] sm:$0xff]  ;;  %v1380_v33 = vld [vmem:[%s2006_s3 + $0x28] sm:$0xff] }
   0x8   :  { %1629 = vmatpush3.bf16.msra.mxu0 %v1628_v7  ;;  %v477_v28 = vld [vmem:[%s2011_s5] sm:$0xff]  ;;  %v479_v35 = vld [vmem:[%s2011_s5 + $0x10] sm:$0xff]  ;;  %v480_v36 = vld [vmem:[%s2011_s5 + $0x18] sm:$0xff] }
   0x9   :  { %v1281_v30 = vld [vmem:[%s2010_s12] sm:$0xff]  ;;  %v1636_v31 = vpack.c.bf16 %v478_v29, %v477_v28  ;;  %v1640_v37 = vpack.c.bf16 %v480_v36, %v479_v35  ;;  %v563_v39 = vld [vmem:[%s2012_s6 + $0x8] sm:$0xff]  ;;  %v564_v47 = vld [vmem:[%s2012_s6 + $0x10] sm:$0xff] }
   0xa   :  { %v562_v38 = vld [vmem:[%s2012_s6] sm:$0xff]  ;;  %v565_v48 = vld [vmem:[%s2012_s6 + $0x18] sm:$0xff]  ;;  %v650_v53 = vld [vmem:[%s2013_s2 + $0x8] sm:$0xff] }
   0xb   :  { %1501 = vmatmul.mubr.msk.f32.vlgmr.msra.gmra.mrb[0].mxu0 %vm51_vm1, %v44_v8  ;;  %470 = vperm.xlu0 %1702, %v462_v24   ;;  %v1644_v40 = vpack.c.bf16 %v563_v39, %v562_v38  ;;  %v1648_v51 = vpack.c.bf16 %v565_v48, %v564_v47  ;;  %v649_v52 = vld [vmem:[%s2013_s2] sm:$0xff]  ;;  %v651_v55 = vld [vmem:[%s2013_s2 + $0x10] sm:$0xff]  ;;  %v1402_v56 = vld [vmem:[%s2013_s2 + $0x18] sm:$0xff] }
   0xc   :  { %1637 = vmatprep.subr.bf16.mxu0 %v1636_v31  ;;  %v1652_v54 = vpack.c.bf16 %v650_v53, %v649_v52  ;;  %v1403_v57 = vld [vmem:[%s2013_s2 + $0x20] sm:$0xff]  ;;  %v1404_v5 = vld [vmem:[%s2013_s2 + $0x28] sm:$0xff]  ;;  %v1392_v18 = vld [vmem:[%s2014_s7 + $0x30] sm:$0xff] }
   0xd   :  { %1639 = vmatpush3.bf16.msra.mxu0 %v1636_v31  ;;  %v1664_v58 = vpack.c.bf16 %v1403_v57, %v1402_v56  ;;  %v1390_v7 = vld [vmem:[%s2014_s7 + $0x20] sm:$0xff]  ;;  %v1120_v9 = vld [vmem:[%s2008_s8 + $0x8] sm:$0xff]  ;;  %v647_v24 = vld [vmem:[%s2014_s7 + $0x10] sm:$0xff] }
   0xe   :  { %1641 = vmatprep.subr.bf16.mxu0 %v1640_v37  ;;  %v645_v22 = vld [vmem:[%s2014_s7] sm:$0xff]  ;;  %v646_v23 = vld [vmem:[%s2014_s7 + $0x8] sm:$0xff]  ;;  %v1409_v28 = vld [vmem:[%s2014_s7 + $0x50] sm:$0xff] }
   0xf   :  { %1135 = vperm.xlu0 %1702, %v1121_v25   ;;  %v648_v25 = vld [vmem:[%s2014_s7 + $0x18] sm:$0xff] }
  0x10   :  { %v1410_v29 = vld [vmem:[%s2014_s7 + $0x58] sm:$0xff] }
  0x11   :  { %1643 = vmatpush3.bf16.msra.mxu0 %v1640_v37 }
  0x12   :  { %1645 = vmatprep.subr.bf16.mxu0 %v1644_v40 }
  0x13   :  { %1161 = vperm.xlu0 %1702, %v1155_v26   ;;  %v1407_v26 = vld [vmem:[%s2014_s7 + $0x40] sm:$0xff] }
  0x17   :  { %1171 = vperm.xlu0 %1702, %v1157_v27   ;;  %v1408_v27 = vld [vmem:[%s2014_s7 + $0x48] sm:$0xff] }
  0x1b   :  { %1284 = vperm.xlu0 %1702, %v1281_v30   ;;  %v1151_v30 = vld [vmem:[%s2015_s9] sm:$0xff] }
  0x86   :  { %v466_v41 = vpop.permute.xlu0 %465 }
  0x8a   :  { %v471_v42 = vpop.permute.xlu0 %470 }
  0xde   :  { %v121_v10 = vpop.f32.mrb[0].mxu0 }
  0xdf   :  { %v1502_v12 = vpop.f32.mrb[1].mxu0  ;;  %1503 = vmatprep.subr.msk.mxu1 %vm135_vm3, %v121_v10 }
  0xe0   :  { %1504 = vmatpush3.msk.msra.mxu1 %vm135_vm3, %v121_v10  ;;  %v1122_v10 = vld [vmem:[%s2008_s8 + $0x18] sm:$0xff] }
  0xe1   :  { %1506 = vmatmul.mubr.msk.f32.vlgmr.msra.gmra.mrb[0].mxu1 %vm128_vm2, %v1367_v11  ;;  %1508 = vmatprep.subr.msk.mxu1 %vm135_vm3, %v44_v8  ;;  %v1156_v11 = vld [vmem:[%s2009_s10 + $0x8] sm:$0xff]  ;;  %v1158_v12 = vld [vmem:[%s2009_s10 + $0x18] sm:$0xff] }
  0xe2   :  { %1509 = vmatpush3.msk.msra.mxu1 %vm135_vm3, %v44_v8  ;;  %1510 = vmatprep.mubr.msk.f32.mxu1 %vm128_vm2, %v45_v13 }
  0xe3   :  { %1630 = vmatprep.subr.bf16.mxu1 %v1704_v0 }
  0xe9   :  { %1511 = vmatmul.mubr.msk.f32.vlgmr.msra.gmra.mrb[0].mxu1 %vm128_vm2, %v46_v16  ;;  %v1391_v16 = vld [vmem:[%s2014_s7 + $0x28] sm:$0xff] }
  0xea   :  { %1632 = vmatpush3.bf16.msra.mxu1 %v1631_v17  ;;  %1521 = vmatprep.mubr.msk.f32.mxu1 %vm1705_vm0, %v1706_v4 }
  0xeb   :  { %1633 = vmatprep.subr.bf16.mxu1 %v1704_v0 }
  0xee   :  { %1635 = vmatpush3.bf16.msra.mxu1 %v1634_v20 }
  0xf1   :  { %1522 = vmatmul.mubr.msk.f32.vlgmr.msra.gmra.mrb[2].mxu1 %vm51_vm1, %v44_v8  ;;  %v1119_v8 = vld [vmem:[%s2008_s8] sm:$0xff] }
  0xf2   :  { %1526 = vmatprep.mubr.msk.f32.mxu1 %vm128_vm2, %v1379_v21  ;;  %1125 = vperm.xlu1 %1703, %v1119_v8   ;;  %v1393_v21 = vld [vmem:[%s2014_s7 + $0x38] sm:$0xff] }
  0xf6   :  { %1130 = vperm.xlu1 %1703, %v1120_v9  }
  0xfa   :  { %1140 = vperm.xlu1 %1703, %v1122_v10  }
  0xfe   :  { %1166 = vperm.xlu1 %1703, %v1156_v11  }
 0x102   :  { %1176 = vperm.xlu1 %1703, %v1158_v12  }
 0x171   :  { %v1126_v31 = vpop.permute.xlu1 %1125 }
 0x1c4   :  { %v368_v32 = vpop.f32.mrb[2].mxu1 }
 0x1c5   :  { %v1523_v34 = vpop.f32.mrb[3].mxu1  ;;  %1524 = vmatprep.subr.msk.mxu1 %vm135_vm3, %v368_v32 }
 0x1c6   :  { %1525 = vmatpush3.msk.msra.mxu1 %vm135_vm3, %v368_v32  ;;  %v1131_v32 = vpop.permute.xlu1 %1130 }
 0x1c7   :  { %1527 = vmatmul.mubr.msk.f32.vlgmr.msra.gmra.mrb[0].mxu1 %vm128_vm2, %v1380_v33  ;;  %1653 = vmatprep.subr.bf16.mxu1 %v1652_v54 }
 0x1c8   :  { %1655 = vmatpush3.bf16.msra.mxu1 %v1652_v54 }
 0x1c9   :  { %1555 = vmatprep.subr.mxu1 %v651_v55 }
 0x1ca   :  { %v1141_v38 = vpop.permute.xlu1 %1140 }
 0x1cc   :  { %1556 = vmatpush3.msra.mxu1 %v651_v55 }
 0x1cd   :  { %1665 = vmatprep.subr.bf16.mxu1 %v1664_v58 }
 0x1ce   :  { %v1167_v52 = vpop.permute.xlu1 %1166 }
 0x29a   :  { %v1528_v43 = vpop.f32.mrb[0].mxu1 }
 0x29b   :  { %v474_v44 = vadd.f32 %v1528_v43, %v471_v42  ;;  %v450_v45 = vpop.f32.mrb[1].mxu1 }
 0x29c   :  { %v473_v46 = vadd.f32 %v466_v41, %v450_v45  ;;  %v1136_v41 = vpop.permute.xlu0 %1135 }
 0x29d   :  { %v476_v50 = vmax.f32 %v474_v44, 0.0 }
 0x29e   :  { %v475_v49 = vmax.f32 %v473_v46, 0.0 }
 0x2a0   :  { %1537 = vmatprep.mubr.msk.f32.mxu0 %vm51_vm1, %v475_v49  ;;  %v1162_v53 = vpop.permute.xlu0 %1161 }
 0x2a1   :  { %1538 = vmatmul.mubr.msk.f32.vlgmr.msra.gmra.mrb[2].mxu0 %vm51_vm1, %v476_v50 }
 0x2a2   :  { %1647 = vmatpush3.bf16.msra.mxu0 %v1644_v40  ;;  %1548 = vmatprep.mubr.msk.f32.mxu0 %vm51_vm1, %v475_v49  ;;  %v1152_v49 = vld [vmem:[%s2015_s9 + $0x8] sm:$0xff] }
 0x2a3   :  { %1649 = vmatprep.subr.bf16.mxu0 %v1648_v51 }
 0x2a6   :  { %1651 = vmatpush3.bf16.msra.mxu0 %v1648_v51  ;;  %v1154_v51 = vld [vmem:[%s2015_s9 + $0x18] sm:$0xff] }
 0x2a9   :  { %1549 = vmatmul.mubr.msk.f32.vlgmr.msra.gmra.mrb[4].mxu0 %vm51_vm1, %v476_v50  ;;  %v1153_v50 = vld [vmem:[%s2015_s9 + $0x10] sm:$0xff] }
 0x2aa   :  { %1564 = vmatprep.mubr.msk.f32.mxu0 %vm739_vm5, %v1390_v7  ;;  %v1280_v7 = vld [vmem:[%s2016_s11] sm:$0xff] }
 0x374   :  { %v1539_v59 = vpop.f32.mrb[2].mxu0 }
 0x375   :  { %v553_v60 = vpop.f32.mrb[3].mxu0 }
 0x37c   :  { %v1550_v61 = vpop.f32.mrb[4].mxu0 }
 0x37d   :  { %v642_v62 = vmax.f32 %v1539_v59, %v1550_v61  ;;  %v632_v63 = vpop.f32.mrb[5].mxu0  ;;  %v1177_v59 = vpop.permute.xlu1 %1176 }
 0x37e   :  { %v641_v1 = vmax.f32 %v553_v60, %v632_v63 }
 0x37f   :  { %v644_v2 = vmax.f32 %v642_v62, 0.0  ;;  %v1172_v62 = vpop.permute.xlu0 %1171 }
 0x380   :  { %v643_v3 = vmax.f32 %v641_v1, 0.0 }
 0x382   :  { %1557 = vmatprep.mubr.msk.f32.mxu1 %vm652_vm4, %v643_v3  ;;  %v1660_v6 = vpack.c.bf16 %v644_v2, %v643_v3 }
 0x383   :  { %1558 = vmatmul.mubr.msk.f32.vlgmr.msra.gmra.mrb[4].mxu1 %vm652_vm4, %v644_v2  ;;  %v1285_v8 = vpop.permute.xlu0 %1284 }
 0x384   :  { %1667 = vmatpush3.bf16.msra.mxu1 %v1664_v58  ;;  %1586 = vmatprep.mubr.msk.f32.mxu1 %vm652_vm4, %v643_v3 }
 0x385   :  { %1584 = vmatprep.subr.mxu1 %v1404_v5 }
 0x388   :  { %1585 = vmatpush3.msra.mxu1 %v1404_v5 }
 0x389   :  { %1587 = vmatmul.mubr.msk.f32.vlgmr.msra.gmra.mrb[6].mxu1 %vm652_vm4, %v644_v2 }
 0x38a   :  { %1607 = vmatprep.mubr.msk.f32.mxu1 %vm51_vm1, %v1151_v30 }
 0x456   :  { %v1559_v13 = vpop.f32.mrb[4].mxu1 }
 0x457   :  { %v725_v14 = vpop.f32.mrb[5].mxu1 }
 0x458   :  { %v1656_v15 = vpack.c.bf16 %v1559_v13, %v725_v14 }
 0x45a   :  { %1657 = vmatprep.subr.bf16.mxu0 %v1656_v15 }
 0x45b   :  { %1659 = vmatpush3.bf16.msra.mxu0 %v1656_v15 }
 0x45c   :  { %v1588_v17 = vpop.f32.mrb[6].mxu1  ;;  %1661 = vmatprep.subr.bf16.mxu0 %v1660_v6 }
 0x45d   :  { %v1004_v19 = vpop.f32.mrb[7].mxu1 }
 0x45e   :  { %v1668_v20 = vpack.c.bf16 %v1588_v17, %v1004_v19  ;;  %1565 = vmatmul.mubr.msk.f32.vlgmr.msra.gmra.mrb[6].mxu0 %vm739_vm5, %v1391_v16 }
 0x45f   :  { %1663 = vmatpush3.bf16.msra.mxu0 %v1660_v6  ;;  %1567 = vmatprep.mubr.msk.f32.mxu0 %vm739_vm5, %v1392_v18 }
 0x460   :  { %1669 = vmatprep.subr.bf16.mxu0 %v1668_v20 }
 0x462   :  { %1568 = vmatmul.mubr.msk.f32.gmra.mrb[8].mxu0 %vm739_vm5, %v1393_v21 }
 0x463   :  { %1574 = vmatprep.mubr.msk.f32.mxu0 %vm739_vm5, %v645_v22 }
 0x466   :  { %1575 = vmatmul.mubr.msk.f32.vlgmr.msra.gmra.mrb[6].mxu0 %vm739_vm5, %v646_v23 }
 0x467   :  { %1671 = vmatpush3.bf16.msra.mxu0 %v1668_v20  ;;  %1577 = vmatprep.mubr.msk.f32.mxu0 %vm739_vm5, %v647_v24 }
 0x46a   :  { %1578 = vmatmul.mubr.msk.f32.gmra.mrb[8].mxu0 %vm739_vm5, %v648_v25 }
 0x46b   :  { %1593 = vmatprep.mubr.msk.f32.mxu0 %vm739_vm5, %v1407_v26 }
 0x46e   :  { %1594 = vmatmul.mubr.msk.f32.vlgmr.msra.gmra.mrb[6].mxu0 %vm739_vm5, %v1408_v27 }
 0x46f   :  { %1596 = vmatprep.mubr.msk.f32.mxu0 %vm739_vm5, %v1409_v28 }
 0x472   :  { %1597 = vmatmul.mubr.msk.f32.gmra.mrb[8].mxu0 %vm739_vm5, %v1410_v29 }
 0x541   :  { %v1595_v33 = vpop.f32.mrb[6].mxu0 }
 0x542   :  { %v1144_v34 = vadd.f32 %v1595_v33, %v1131_v32  ;;  %v1096_v35 = vpop.f32.mrb[7].mxu0 }
 0x543   :  { %v1143_v36 = vadd.f32 %v1126_v31, %v1096_v35 }
 0x544   :  { %v1148_v37 = vmax.f32 %v1144_v34, 0.0 }
 0x545   :  { %v1147_v39 = vmax.f32 %v1143_v36, 0.0  ;;  %v1598_v40 = vpop.f32.mrb[8].mxu0 }
 0x546   :  { %v1146_v42 = vadd.f32 %v1598_v40, %v1141_v38  ;;  %v1106_v43 = vpop.f32.mrb[9].mxu0 }
 0x547   :  { %v1672_v44 = vpack.c.bf16 %v1148_v37, %v1147_v39  ;;  %v1145_v45 = vadd.f32 %v1136_v41, %v1106_v43 }
 0x548   :  { %v1150_v46 = vmax.f32 %v1146_v42, 0.0 }
 0x549   :  { %v1149_v47 = vmax.f32 %v1145_v45, 0.0  ;;  %1673 = vmatprep.subr.bf16.mxu1 %v1672_v44 }
 0x54a   :  { %1675 = vmatpush3.bf16.msra.mxu1 %v1672_v44 }
 0x54b   :  { %v1676_v48 = vpack.c.bf16 %v1150_v46, %v1149_v47 }
 0x54d   :  { %1677 = vmatprep.subr.bf16.mxu1 %v1676_v48 }
 0x54e   :  { %1679 = vmatpush3.bf16.msra.mxu1 %v1676_v48 }
 0x54f   :  { %1680 = vmatprep.subr.bf16.mxu1 %v1704_v0 }
 0x551   :  { %1608 = vmatmul.mubr.msk.f32.vlgmr.msra.gmra.mrb[8].mxu1 %vm51_vm1, %v1152_v49 }
 0x552   :  { %1610 = vmatprep.mubr.msk.f32.mxu1 %vm51_vm1, %v1153_v50 }
 0x555   :  { %1611 = vmatmul.mubr.msk.f32.gmra.mrb[10].mxu1 %vm51_vm1, %v1154_v51 }
 0x556   :  { %1621 = vmatprep.mubr.msk.f32.mxu1 %vm1705_vm0, %v1706_v4 }
 0x624   :  { %v1609_v54 = vpop.f32.mrb[8].mxu1 }
 0x625   :  { %v1263_v55 = vadd.f32 %v1609_v54, %v1167_v52  ;;  %v1257_v56 = vpop.f32.mrb[9].mxu1 }
 0x626   :  { %v1258_v57 = vadd.f32 %v1257_v56, %v1162_v53 }
 0x627   :  { %v1277_v58 = vmax.f32 %v1263_v55, 0.0 }
 0x628   :  { %v1276_v60 = vmax.f32 %v1258_v57, 0.0  ;;  %v1612_v61 = vpop.f32.mrb[10].mxu1 }
 0x629   :  { %v1273_v63 = vadd.f32 %v1612_v61, %v1177_v59  ;;  %v1267_v1 = vpop.f32.mrb[11].mxu1 }
 0x62a   :  { %v1681_v2 = vpack.c.bf16 %v1277_v58, %v1276_v60  ;;  %v1268_v3 = vadd.f32 %v1267_v1, %v1172_v62 }
 0x62b   :  { %v1279_v5 = vmax.f32 %v1273_v63, 0.0 }
 0x62c   :  { %v1278_v6 = vmax.f32 %v1268_v3, 0.0  ;;  %1682 = vmatpush3.bf16.msra.mxu1 %v1681_v2 }
 0x62d   :  { %1683 = vmatprep.subr.bf16.mxu1 %v1704_v0 }
 0x62e   :  { %v1684_v4 = vpack.c.bf16 %v1279_v5, %v1278_v6 }
 0x630   :  { %1685 = vmatpush3.bf16.msra.mxu1 %v1684_v4 }
 0x633   :  { %1622 = vmatmul.mubr.msk.f32.vlgmr.msra.gmra.mrb[12].mxu1 %vm51_vm1, %v1280_v7 }
 0x706   :  { %v1356_v9 = vpop.f32.mrb[12].mxu1 }
 0x707   :  { %v1357_v10 = vadd.f32 %v1356_v9, %v1285_v8  ;;  %v1623_v11 = vpop.f32.mrb[13].mxu1 }
 0x709   :  { %1360 = vst.msk [vmem:[%s2017_s13] sm:$0xff] %vm652_vm4, %v1357_v10 }

</bundles_post_ra>
